<compile_context>
chip_gen: v5e
topology: v5e:2x2
jax: 0.10.0
libtpu: 0.0.40
codegen_flags: <defaults>
</compile_context>

<pallas_src>
import functools

import jax
import jax.numpy as jnp
from jax import lax
from jax.experimental import pallas as pl
from jax.experimental.pallas import tpu as pltpu


def _round_up(x, q):
    return -(-x // q) * q


def _physical_vmem_bytes():
    """Per-core VMEM capacity; conservative fallback if the query fails."""
    try:
        info = pltpu.get_tpu_info()
        v = int(getattr(info, "vmem_capacity_bytes", 0))
        if v > 0:
            return max(32 << 20, min(v, 128 << 20))
    except Exception:
        pass
    return 64 << 20  # v7x-sized fallback: safe on every generation


def _choose_tk(c, m, itemsize, budget):
    """Pick the reduction tile tk (lane width of the streamed F block).

    Returns (tk, single_buffer).  Whole-F-resident when it fits the budget
    (single-buffered if that is what makes it fit); otherwise the largest
    128-multiple that fits double-buffered, preferring one that divides m.
    """
    cp8 = _round_up(c, 8)
    # Output accumulator blocks (gram + row sum), conservatively double-buffered.
    fixed = 2 * cp8 * _round_up(c, 128) * 4 + 2 * cp8 * 128 * 4
    avail = max(budget - fixed, 2 * cp8 * 128 * itemsize)
    col_db = 2 * cp8 * itemsize            # per-column bytes, double-buffered
    col_sb = cp8 * itemsize                # per-column bytes, single-buffered
    m_pad = _round_up(m, 128)
    if m_pad * col_db <= avail:
        return m, False                    # whole F resident, default pipeline
    if m_pad * col_sb <= avail:
        return m, True                     # whole F resident, single buffer
    tk_max = max((int(avail // col_db) // 128) * 128, 128)
    tk_max = min(tk_max, max((m // 128) * 128, 128))
    # Prefer a tk that divides m exactly (drops the masked tail entirely),
    # but only if it stays close to the maximum feasible tile.
    lo = max(128, (tk_max * 3) // 4)
    for t in range(tk_max, lo - 1, -128):
        if m % t == 0:
            return t, False
    return tk_max, False


def _cov_accum_kernel(f_ref, gram_ref, rsum_ref, *,
                      m, tk, k_per_part, m_full, need_any_mask):
    """Accumulate partial F F^T and row sums for one reduction partition."""
    p = pl.program_id(0)
    k = pl.program_id(1)
    g = p * k_per_part + k                 # global column-tile index

    @pl.when(k == 0)
    def _():
        gram_ref[...] = jnp.zeros_like(gram_ref)
        rsum_ref[...] = jnp.zeros_like(rsum_ref)

    def accumulate(masked):
        f_blk = f_ref[...]                 # (C, tk), native dtype
        if masked:
            # Zero columns >= m: the partial tail tile and (when the global
            # tile count is odd) partition 1's duplicated out-of-range tile.
            col = g * tk + lax.broadcasted_iota(jnp.int32, f_blk.shape, 1)
            f_blk = jnp.where(col < m, f_blk, jnp.zeros_like(f_blk))
        # Hot path: F_blk @ F_blk^T on the MXU via lane-vs-lane contraction
        # (no transpose materialized), accumulated into the resident f32 block.
        gram_ref[...] += lax.dot_general(
            f_blk, f_blk,
            dimension_numbers=(((1,), (1,)), ((), ())),
            preferred_element_type=jnp.float32)
        # Row sums accumulated in f32 (lane reduction; no explicit full-tile cast).
        rsum_ref[...] += jnp.sum(f_blk, axis=1, keepdims=True, dtype=jnp.float32)

    if need_any_mask:
        @pl.when(g < m_full)               # hot, unmasked path
        def _():
            accumulate(False)

        @pl.when(g >= m_full)              # tail / out-of-range path (<= 2 steps total)
        def _():
            accumulate(True)
    else:
        accumulate(False)


def covariance_matrix(source, *, tk=None, stream_bf16=False):
    """source: (1, C, H, W) -> (C, C) covariance, matching the PyTorch module."""
    one, c, h, w = source.shape
    assert one == 1, "CovarianceMatrix expects NCHW with N=1"
    m = h * w
    f = source.reshape(c, m)               # free reshape (contiguous)
    if stream_bf16 and f.dtype == jnp.float32:
        f = f.astype(jnp.bfloat16)          # opt-in: halves HBM bytes of F
    itemsize = f.dtype.itemsize

    physical = _physical_vmem_bytes()
    budget = (physical * 3) // 4            # ~96 MiB v5e/v6e, ~48 MiB v7x
    limit_cap = physical - (8 << 20)        # leave compiler headroom

    single_buffer = False
    if tk is None:
        tk, single_buffer = _choose_tk(c, m, itemsize, budget)
    else:
        tk = int(tk)
        if tk >= m:
            tk = m
        else:
            tk = max((tk // 128) * 128, 128)
            if tk > m:
                tk = m

    k_real = pl.cdiv(m, tk)                 # real column tiles
    num_parts = 2 if k_real >= 2 else 1     # split reduction across TensorCores
    k_per_part = pl.cdiv(k_real, num_parts)
    guard_oob = (num_parts * k_per_part) != k_real   # odd tile count -> 1 dup tile
    m_full = m // tk                        # tiles fully inside [0, m)
    need_any_mask = (m % tk != 0) or guard_oob

    # Scoped VMEM limit: actual footprint + headroom, generation-aware cap.
    cp8 = _round_up(c, 8)
    buf_in = 1 if single_buffer else 2
    est = (buf_in * cp8 * _round_up(tk, 128) * itemsize
           + 2 * cp8 * _round_up(c, 128) * 4
           + 2 * cp8 * 128 * 4)
    vmem_limit = int(min(max(32 << 20, est + (8 << 20)), limit_cap))

    if guard_oob:
        def in_index(p, k):
            # Clamp the (single) out-of-range tile to a valid block; the kernel
            # fully masks it so it contributes nothing.
            return (0, jnp.minimum(p * k_per_part + k, k_real - 1))
    else:
        def in_index(p, k):
            return (0, p * k_per_part + k)

    in_spec_kwargs = {}
    if single_buffer:
        in_spec_kwargs["pipeline_mode"] = pl.Buffered(1)
    in_spec = pl.BlockSpec((c, tk), in_index, **in_spec_kwargs)

    kernel = functools.partial(
        _cov_accum_kernel, m=m, tk=tk, k_per_part=k_per_part,
        m_full=m_full, need_any_mask=need_any_mask)

    grams, rsums = pl.pallas_call(
        kernel,
        out_shape=(
            jax.ShapeDtypeStruct((num_parts, c, c), jnp.float32),
            jax.ShapeDtypeStruct((num_parts, c, 1), jnp.float32),
        ),
        grid_spec=pltpu.PrefetchScalarGridSpec(
            num_scalar_prefetch=0,
            grid=(num_parts, k_per_part),
            in_specs=[in_spec],
            out_specs=(
                pl.BlockSpec((None, c, c), lambda p, k: (p, 0, 0)),
                pl.BlockSpec((None, c, 1), lambda p, k: (p, 0, 0)),
            ),
        ),
        compiler_params=pltpu.CompilerParams(
            dimension_semantics=("parallel", "arbitrary"),
            vmem_limit_bytes=vmem_limit),
    )(f)

    # Tiny (C, C) finalize in the wrapper: combine partitions, then
    # G = (sum(F F^T)/m - mean mean^T) / C   (matches the PyTorch module).
    gram = jnp.sum(grams, axis=0)
    rsum = jnp.sum(rsums, axis=0)
    inv_m = 1.0 / float(m)
    mean = rsum * inv_m                                   # (C, 1)
    return (gram * inv_m - mean * jnp.transpose(mean)) * (1.0 / float(c))


def _reference(source):
    one, c, h, w = source.shape
    m = h * w
    f = source.reshape(c, m).astype(jnp.float32)
    a = jnp.mean(f, axis=1, keepdims=True)
    return (jnp.dot(f, f.T) / m - jnp.dot(a, a.T)) / c


if __name__ == "__main__":
    # Primary case (the module implies batch=1): C=4, H=W=16.
    x = jax.random.normal(jax.random.PRNGKey(0), (1, 4, 16, 16), dtype=jnp.float32)
    g = jax.block_until_ready(covariance_matrix(x))
    g_ref = _reference(x)
    assert g.shape == (4, 4)
    assert jnp.allclose(g, g_ref, atol=1e-4, rtol=1e-4), (
        "primary: max abs err %s" % jnp.max(jnp.abs(g - g_ref)))

    # Extra coverage of the tiled / dual-partition / masked-tail paths
    # (forced small tk so the reduction grid has several steps).
    k2, k3 = jax.random.split(jax.random.PRNGKey(1))
    x2 = jax.random.normal(k2, (1, 8, 20, 20), dtype=jnp.float32)   # m=400, 4 tiles
    g2 = jax.block_until_ready(covariance_matrix(x2, tk=128))
    assert jnp.allclose(g2, _reference(x2), atol=1e-4, rtol=1e-4), "tiled case mismatch"

    x3 = jax.random.normal(k3, (1, 8, 15, 20), dtype=jnp.float32)   # m=300, 3 tiles (odd)
    g3 = jax.block_until_ready(covariance_matrix(x3, tk=128))
    assert jnp.allclose(g3, _reference(x3), atol=1e-4, rtol=1e-4), "odd-tile case mismatch"

    print("KERNEL_OK")
</pallas_src>

<mosaic_0001>
module attributes {stable_mosaic.version = 11 : i64} {
  func.func @_cov_accum_kernel(%arg0: i32, %arg1: i32, %arg2: memref<4x256xf32, #tpu.memory_space<vmem>>, %arg3: memref<1x4x4xf32, #tpu.memory_space<vmem>>, %arg4: memref<1x4x1xf32, #tpu.memory_space<vmem>>) attributes {dimension_semantics = [#tpu.dimension_semantics<parallel>, #tpu.dimension_semantics<arbitrary>], iteration_bounds = array<i64: 1, 1>, scalar_prefetch = 0 : i64, scratch_operands = 0 : i64, tpu.core_type = #tpu.core_type<tc>, window_params = [{transform_indices = @transform_0, window_bounds = array<i64: 4, 256>}, {transform_indices = @transform_1, window_bounds = array<i64: 1, 4, 4>}, {transform_indices = @transform_2, window_bounds = array<i64: 1, 4, 1>}]} {
    %c0_i32 = arith.constant 0 : i32
    %0 = arith.cmpi eq, %arg1, %c0_i32 : i32
    %1 = arith.extui %0 : i1 to i32
    %c0_i32_0 = arith.constant 0 : i32
    %2 = arith.cmpi ne, %1, %c0_i32_0 : i32
    scf.if %2 {
      %cst_15 = arith.constant 0.000000e+00 : f32
      %19 = vector.broadcast %cst_15 : f32 to vector<4x4xf32>
      %c0_16 = arith.constant 0 : index
      %c0_17 = arith.constant 0 : index
      %c0_18 = arith.constant 0 : index
      %20 = vector.load %arg3[%c0_16, %c0_17, %c0_18] : memref<1x4x4xf32, #tpu.memory_space<vmem>>, vector<1x4x4xf32>
      %21 = vector.shape_cast %20 : vector<1x4x4xf32> to vector<4x4xf32>
      %22 = vector.shape_cast %19 : vector<4x4xf32> to vector<1x4x4xf32>
      tpu.vector_store %arg3[%c0_16, %c0_17, %c0_18], %22 {strides = array<i32>} : memref<1x4x4xf32, #tpu.memory_space<vmem>>, vector<1x4x4xf32>,
      %cst_19 = arith.constant 0.000000e+00 : f32
      %23 = vector.broadcast %cst_19 : f32 to vector<4x1xf32>
      %c0_20 = arith.constant 0 : index
      %c0_21 = arith.constant 0 : index
      %c0_22 = arith.constant 0 : index
      %24 = vector.load %arg4[%c0_20, %c0_21, %c0_22] : memref<1x4x1xf32, #tpu.memory_space<vmem>>, vector<1x4x1xf32>
      %25 = vector.shape_cast %24 : vector<1x4x1xf32> to vector<4x1xf32>
      %26 = vector.shape_cast %23 : vector<4x1xf32> to vector<1x4x1xf32>
      tpu.vector_store %arg4[%c0_20, %c0_21, %c0_22], %26 {strides = array<i32>} : memref<1x4x1xf32, #tpu.memory_space<vmem>>, vector<1x4x1xf32>,
    } else {
    }
    %c0 = arith.constant 0 : index
    %c0_1 = arith.constant 0 : index
    %3 = vector.load %arg2[%c0, %c0_1] : memref<4x256xf32, #tpu.memory_space<vmem>>, vector<4x256xf32>
    %c0_2 = arith.constant 0 : index
    %c0_3 = arith.constant 0 : index
    %c0_4 = arith.constant 0 : index
    %4 = vector.load %arg3[%c0_2, %c0_3, %c0_4] : memref<1x4x4xf32, #tpu.memory_space<vmem>>, vector<1x4x4xf32>
    %5 = vector.shape_cast %4 : vector<1x4x4xf32> to vector<4x4xf32>
    %cst = arith.constant dense<0.000000e+00> : vector<4x4xf32>
    %6 = tpu.matmul %3, %3, %cst {dimension_numbers = #tpu.dot_dimension_numbers<[1], [1], [0], [0], [0, 0, 1, 0], [], []>} : vector<4x256xf32>, vector<4x256xf32>, vector<4x4xf32> -> vector<4x4xf32>
    %7 = arith.addf %5, %6 : vector<4x4xf32>
    %c0_5 = arith.constant 0 : index
    %c0_6 = arith.constant 0 : index
    %c0_7 = arith.constant 0 : index
    %8 = vector.load %arg3[%c0_5, %c0_6, %c0_7] : memref<1x4x4xf32, #tpu.memory_space<vmem>>, vector<1x4x4xf32>
    %9 = vector.shape_cast %8 : vector<1x4x4xf32> to vector<4x4xf32>
    %10 = vector.shape_cast %7 : vector<4x4xf32> to vector<1x4x4xf32>
    tpu.vector_store %arg3[%c0_5, %c0_6, %c0_7], %10 {strides = array<i32>} : memref<1x4x4xf32, #tpu.memory_space<vmem>>, vector<1x4x4xf32>,
    %c0_8 = arith.constant 0 : index
    %c0_9 = arith.constant 0 : index
    %c0_10 = arith.constant 0 : index
    %11 = vector.load %arg4[%c0_8, %c0_9, %c0_10] : memref<1x4x1xf32, #tpu.memory_space<vmem>>, vector<1x4x1xf32>
    %12 = vector.shape_cast %11 : vector<1x4x1xf32> to vector<4x1xf32>
    %cst_11 = arith.constant dense<0.000000e+00> : vector<4xf32>
    %13 = vector.multi_reduction <add>, %3, %cst_11 [1] : vector<4x256xf32> to vector<4xf32>
    %14 = vector.shape_cast %13 : vector<4xf32> to vector<4x1xf32>
    %15 = arith.addf %12, %14 : vector<4x1xf32>
    %c0_12 = arith.constant 0 : index
    %c0_13 = arith.constant 0 : index
    %c0_14 = arith.constant 0 : index
    %16 = vector.load %arg4[%c0_12, %c0_13, %c0_14] : memref<1x4x1xf32, #tpu.memory_space<vmem>>, vector<1x4x1xf32>
    %17 = vector.shape_cast %16 : vector<1x4x1xf32> to vector<4x1xf32>
    %18 = vector.shape_cast %15 : vector<4x1xf32> to vector<1x4x1xf32>
    tpu.vector_store %arg4[%c0_12, %c0_13, %c0_14], %18 {strides = array<i32>} : memref<1x4x1xf32, #tpu.memory_space<vmem>>, vector<1x4x1xf32>,
    return
  }
  func.func @transform_0(%arg0: i32, %arg1: i32) -> (i32, i32) {
    %c1_i32 = arith.constant 1 : i32
    %0 = arith.muli %arg0, %c1_i32 : i32
    %1 = arith.addi %0, %arg1 : i32
    %c0_i32 = arith.constant 0 : i32
    %c0_i32_0 = arith.constant 0 : i32
    return %c0_i32, %1 : i32, i32
  }
  func.func @transform_1(%arg0: i32, %arg1: i32) -> (i32, i32, i32) {
    %c0_i32 = arith.constant 0 : i32
    %c0_i32_0 = arith.constant 0 : i32
    %c0_i32_1 = arith.constant 0 : i32
    return %arg0, %c0_i32, %c0_i32_0 : i32, i32, i32
  }
  func.func @transform_2(%arg0: i32, %arg1: i32) -> (i32, i32, i32) {
    %c0_i32 = arith.constant 0 : i32
    %c0_i32_0 = arith.constant 0 : i32
    %c0_i32_1 = arith.constant 0 : i32
    return %arg0, %c0_i32, %c0_i32_0 : i32, i32, i32
  }
}

</mosaic_0001>

<bundles_post_ra>
// kernel: tpu_custom_call.1
= control target key start
LH: loop header
LB: loop body
LE: loop exit
PB: predicated region body
PF: predicated region fallthrough
CT: control target
= control target key end

     0   :  { %8 = vsyncpa [#allocation3], 0  ;;  %s221_s0 = inlined_call_operand.hbm [shape: f32[4,256], index: 0, kind: input, shape index: {}]   ;;  %s222_s1 = inlined_call_operand.hbm [shape: f32[1,4,4], index: 1, kind: output, shape index: {0}]   ;;  %s223_s2 = inlined_call_operand.vmem [shape: f32[1,4,1], index: 2, kind: output, shape index: {1}]  }
   0x1   :  { %9 = vsyncpa [#allocation4], 0  ;;  %s19_s11 = sshll.u32 %s221_s0, 4  ;;  %s186_s12 = smov [#allocation2]   ;;  %s20_s11 = int_to_ptr.hbm [resolvable:$true] %s19_s11 }
   0x2   :  { %s21_s13 = sshll.u32 %s186_s12, 4  ;;  %s22_s13 = int_to_ptr.vmem [resolvable:$true] %s21_s13 }
   0x3   :  { %24 = dma.hbm_to_vmem [thread:$0]  %s20_s11, 128, %s22_s13, [#allocation3]  }
   0x4   :  { %182 = dma.done.wait [#allocation3], 128  }
   0x5   :  { %183 = vsyncadd [#allocation3], 4294967168  ;;  %v39_v0 = vld [vmem:[#allocation2] sm:$0xff]  ;;  %vm101_vm0 = vcmask 1043456   ;;  %vm35_vm1 = vcmask 27648   ;;  %v187_v10 = vmov 0.0  }
   0x6   :  { %42 = vst [vmem:[#allocation1] ss:$2 sm:$0xff] %v39_v0  ;;  %vm37_vm2 = vcmask 3072   ;;  %s188_s17 = smov [#allocation5]   ;;  %s117_s21 = sshll.u32 %s222_s1, 4  ;;  %s118_s21 = int_to_ptr.hbm [resolvable:$true] %s117_s21 }
   0x7   :  { %36 = vst.msk [vmem:[#allocation5] sm:$0xf] %vm35_vm1, %v187_v10  ;;  %s115_s18 = sshll.u32 %s188_s17, 4  ;;  %s116_s18 = int_to_ptr.vmem [resolvable:$true] %s115_s18 }
   0x8   :  { %38 = vst.msk [vmem:[%s223_s2] sm:$0xf] %vm37_vm2, %v187_v10 }
   0xd   :  { %v43_v1 = vld.sshfl [vmem:[#allocation1] sm:$0xff pattern:$0x75316420]  ;;  %v44_v2 = vld.sshfl [vmem:[#allocation1 + $0x8] sm:$0xff pattern:$0x75316420] }
   0xe   :  { %47 = vst [vmem:[#allocation1] ss:$2 sm:$0xff] %v39_v0  ;;  %v40_v15 = vld [vmem:[#allocation5] sm:$0xf] }
   0xf   :  { %v95_v11 = vld [vmem:[%s223_s2] sm:$0xf] }
  0x15   :  { %v48_v3 = vld.sshfl [vmem:[#allocation1] sm:$0xff pattern:$0x75316420]  ;;  %v49_v4 = vld.sshfl [vmem:[#allocation1 + $0x8] sm:$0xff pattern:$0x75316420] }
  0x16   :  { %67 = vmatpush.xpose.msra.mxu0 %v48_v3  ;;  %87 = vmatpush.xpose.msra.mxu1 %v49_v4  ;;  %96 = vst [vmem:[#allocation1] ss:$2 sm:$0xff] %v39_v0 }
  0x19   :  { %68 = vmatmul.f32.vlgmr.msra.gmra.mxu0 %v43_v1  ;;  %88 = vmatmul.f32.vlgmr.msra.gmra.mxu1 %v44_v2 }
  0x1d   :  { %v97_v5 = vld.sshfl [vmem:[#allocation1] sm:$0xff pattern:$0x75316420]  ;;  %v98_v6 = vld.sshfl [vmem:[#allocation1 + $0x8] sm:$0xff pattern:$0x75316420] }
  0x1e   :  { %v102_v7 = vsel %vm101_vm0, %v97_v5, 0.0  ;;  %v103_v8 = vsel %vm101_vm0, %v98_v6, 0.0 }
  0x1f   :  { %v104_v9 = vadd.f32 %v103_v8, %v102_v7 }
  0x21   :  { %105 = vadd.xlane.f32.xlu0 %v104_v9 }
  0x94   :  { %v106_v12 = vpop.xlane.xlu0 %105 }
  0x95   :  { %v107_v13 = vadd.f32 %v106_v12, %v95_v11 }
  0x96   :  { %v69_v14 = vpop.f32.mrf.mxu0  ;;  %v89_v16 = vpop.f32.mrf.mxu1 }
  0x97   :  { %v90_v17 = vadd.f32 %v89_v16, %v69_v14  ;;  %109 = vst.msk [vmem:[%s223_s2] sm:$0xf] %vm37_vm2, %v107_v13 }
  0x99   :  { %v92_v18 = vadd.f32 %v90_v17, %v40_v15 }
  0x9b   :  { %94 = vst.msk [vmem:[#allocation5] sm:$0xf] %vm35_vm1, %v92_v18 }
  0x9c   :  { %120 = dma.vmem_to_hbm [thread:$0]  %s116_s18, 64, %s118_s21, [#allocation4]  }
  0x9d   :  { %184 = dma.done.wait [#allocation4], 64  }
  0x9e   :  { %185 = vsyncadd [#allocation4], 4294967232 }
  0x9f   :  { %129 = vsyncpa [#allocation3], 1 }
  0xa0   :  { %130 = vsyncpa [#allocation4], 1 }

</bundles_post_ra>
